<compile_context>
chip_gen: v6e
topology: v6e:2x2x1
jax: 0.10.0
libtpu: 0.0.40
codegen_flags: <defaults>
</compile_context>

<pallas_src>
import functools
import math

import numpy as np
import jax
import jax.numpy as jnp
from jax.experimental import pallas as pl
from jax.experimental.pallas import tpu as pltpu


_N_T = 3                 # translation components per pose row (rest = rotation)
_MAX_TILE_ROWS = 2048    # (2048, 384) f32 = 3 MiB/buffer; x2 inputs x2 buffers = 12 MiB


def _vo_partial_kernel(pred_ref, targ_ref, out_ref, *,
                       rows, tile_rows, lanes, need_mask):
    """Per-block sum of |pred - targ| over rows; lanes are kept (no cross-lane ops)."""
    diff = jnp.abs(pred_ref[...].astype(jnp.float32)
                   - targ_ref[...].astype(jnp.float32))
    if need_mask:
        # Ragged last block: out-of-bounds rows contain garbage -> zero them.
        row_ids = (pl.program_id(0) * tile_rows
                   + jax.lax.broadcasted_iota(jnp.int32, (tile_rows, lanes), 0))
        diff = jnp.where(row_ids < rows, diff, 0.0)
    col_sum = jnp.sum(diff, axis=0, keepdims=True)                 # (1, lanes)
    # Write into sublane 0 of an (8, lanes)-aligned output block (dense vst).
    row_sel = jax.lax.broadcasted_iota(jnp.int32, (8, lanes), 0) == 0
    out_ref[...] = jnp.where(row_sel, col_sum, 0.0)


def atloc_plus_criterion_vo(pred_vos, targ_vos, srx, srq, *,
                            check_nan=False, return_has_nan=False):
    """JAX/Pallas equivalent of AtLocPlusCriterion_VO.forward.

    pred_vos, targ_vos: (..., 6) arrays (3 translation + 3 rotation components).
    srx, srq: scalar parameters. Returns a scalar float32 loss.
    """
    if pred_vos.shape != targ_vos.shape:
        raise ValueError("pred_vos and targ_vos must have the same shape")
    d = int(pred_vos.shape[-1])
    assert d > _N_T, "expected at least 3 translation + 1 rotation components"
    n = int(pred_vos.size) // d              # number of flattened pose rows
    total = n * d

    # Lane width = lcm(d, 128): the t/q lane pattern is row-independent.
    lanes = d * 128 // math.gcd(d, 128)      # 384 for d == 6

    pred_flat = pred_vos.reshape(-1)         # metadata-only reshape
    targ_flat = targ_vos.reshape(-1)
    pad = (-total) % lanes
    if pad:
        # Only copy we ever make; zero pads contribute 0 to all sums, never NaN.
        pred_flat = jnp.pad(pred_flat, (0, pad))
        targ_flat = jnp.pad(targ_flat, (0, pad))
    rows = (total + pad) // lanes
    pred2 = pred_flat.reshape(rows, lanes)   # metadata-only reshape
    targ2 = targ_flat.reshape(rows, lanes)

    tile_rows = rows if rows <= _MAX_TILE_ROWS else _MAX_TILE_ROWS
    num_blocks = (rows + tile_rows - 1) // tile_rows
    need_mask = (rows % tile_rows) != 0

    kernel = functools.partial(_vo_partial_kernel, rows=rows, tile_rows=tile_rows,
                               lanes=lanes, need_mask=need_mask)

    bytes_in = 2 * total * pred_vos.dtype.itemsize
    cost = pl.CostEstimate(flops=4 * rows * lanes, transcendentals=0,
                           bytes_accessed=bytes_in + num_blocks * 8 * lanes * 4)

    partials = pl.pallas_call(
        kernel,
        out_shape=jax.ShapeDtypeStruct((8 * num_blocks, lanes), jnp.float32),
        grid_spec=pltpu.PrefetchScalarGridSpec(
            num_scalar_prefetch=0,
            grid=(num_blocks,),
            in_specs=[pl.BlockSpec((tile_rows, lanes), lambda i: (i, 0)),
                      pl.BlockSpec((tile_rows, lanes), lambda i: (i, 0))],
            out_specs=pl.BlockSpec((8, lanes), lambda i: (i, 0)),
        ),
        compiler_params=pltpu.CompilerParams(
            dimension_semantics=("parallel",),
            vmem_limit_bytes=32 * 1024 * 1024),
        cost_estimate=cost,
    )(pred2, targ2)

    # Tiny epilogue in plain JAX (O(lanes) work): combine partials, split t/q.
    lane_sums = jnp.sum(partials, axis=0)                          # (lanes,)
    t_lane_mask = jnp.asarray((np.arange(lanes) % d) < _N_T, jnp.float32)
    t_sum = jnp.sum(lane_sums * t_lane_mask)
    total_sum = jnp.sum(lane_sums)
    q_sum = total_sum - t_sum

    srx = jnp.asarray(srx, jnp.float32).reshape(())
    srq = jnp.asarray(srq, jnp.float32).reshape(())
    t_loss = t_sum / (n * _N_T)
    q_loss = q_sum / (n * (d - _N_T))
    loss = jnp.exp(-srx) * t_loss + srx + jnp.exp(-srq) * q_loss + srq

    # Any NaN in the valid data propagates into total_sum.
    # Edge case vs torch.isnan(pred).any(): |inf - inf| inputs also flag here.
    has_nan = jnp.isnan(total_sum)

    if check_nan:
        # Debug only: forces a device->host sync per call (matches torch raise).
        # TODO(synk): under jax.jit use jax.experimental.checkify instead.
        if bool(jax.device_get(has_nan)):
            raise Exception('Has_nan in calc_vos. Stop running.')
    if return_has_nan:
        return loss, has_nan
    return loss


def _reference(pred_vos, targ_vos, srx, srq):
    d = pred_vos.shape[-1]
    p = pred_vos.reshape(-1, d).astype(jnp.float32)
    t = targ_vos.reshape(-1, d).astype(jnp.float32)
    t_loss = jnp.mean(jnp.abs(p[:, :3] - t[:, :3]))
    q_loss = jnp.mean(jnp.abs(p[:, 3:] - t[:, 3:]))
    return jnp.exp(-srx) * t_loss + srx + jnp.exp(-srq) * q_loss + srq


if __name__ == "__main__":
    key = jax.random.PRNGKey(0)
    k1, k2, k3, k4 = jax.random.split(key, 4)

    # Shapes from the module docstring: (B, T, 6) after calc_vos.
    B, T, D = 64, 2, 6
    pred_vos = jax.random.normal(k1, (B, T, D), dtype=jnp.float32)
    targ_vos = jax.random.normal(k2, (B, T, D), dtype=jnp.float32)
    srx, srq = 0.0, 0.0   # __init__ defaults

    loss = jax.block_until_ready(atloc_plus_criterion_vo(pred_vos, targ_vos, srx, srq))
    ref = _reference(pred_vos, targ_vos, jnp.float32(srx), jnp.float32(srq))
    assert jnp.allclose(loss, ref, rtol=1e-5, atol=1e-5), (loss, ref)

    # Ragged small case: exercises the zero-pad-to-384 fallback and the
    # single-block (rows not a multiple of 8) path, with nonzero srx/srq.
    p2 = jax.random.normal(k3, (5, 3, 6), dtype=jnp.float32)
    t2 = jax.random.normal(k4, (5, 3, 6), dtype=jnp.float32)
    loss2 = jax.block_until_ready(atloc_plus_criterion_vo(p2, t2, 0.3, -0.2))
    ref2 = _reference(p2, t2, jnp.float32(0.3), jnp.float32(-0.2))
    assert jnp.allclose(loss2, ref2, rtol=1e-5, atol=1e-5), (loss2, ref2)

    print("KERNEL_OK")
</pallas_src>

<mosaic_0001>
module attributes {stable_mosaic.version = 11 : i64} {
  func.func @_vo_partial_kernel(%arg0: i32, %arg1: memref<2x384xf32, #tpu.memory_space<vmem>>, %arg2: memref<2x384xf32, #tpu.memory_space<vmem>>, %arg3: memref<8x384xf32, #tpu.memory_space<vmem>>) attributes {dimension_semantics = [#tpu.dimension_semantics<parallel>], iteration_bounds = array<i64: 1>, scalar_prefetch = 0 : i64, scratch_operands = 0 : i64, tpu.core_type = #tpu.core_type<tc>, window_params = [{transform_indices = @transform_0, window_bounds = array<i64: 2, 384>}, {transform_indices = @transform_1, window_bounds = array<i64: 2, 384>}, {transform_indices = @transform_2, window_bounds = array<i64: 8, 384>}]} {
    %c0 = arith.constant 0 : index
    %c0_0 = arith.constant 0 : index
    %0 = vector.load %arg1[%c0, %c0_0] : memref<2x384xf32, #tpu.memory_space<vmem>>, vector<2x384xf32>
    %c0_1 = arith.constant 0 : index
    %c0_2 = arith.constant 0 : index
    %1 = vector.load %arg2[%c0_1, %c0_2] : memref<2x384xf32, #tpu.memory_space<vmem>>, vector<2x384xf32>
    %2 = arith.subf %0, %1 : vector<2x384xf32>
    %3 = math.absf %2 : vector<2x384xf32>
    %cst = arith.constant dense<0.000000e+00> : vector<384xf32>
    %4 = vector.multi_reduction <add>, %3, %cst [0] : vector<2x384xf32> to vector<384xf32>
    %5 = vector.shape_cast %4 : vector<384xf32> to vector<1x384xf32>
    %6 = tpu.iota {dimensions = array<i32: 0>} : vector<8x384xi32>
    %c0_i32 = arith.constant 0 : i32
    %7 = vector.broadcast %c0_i32 : i32 to vector<8x384xi32>
    %8 = arith.cmpi eq, %6, %7 : vector<8x384xi32>
    %cst_3 = arith.constant 0.000000e+00 : f32
    %9 = vector.shape_cast %5 : vector<1x384xf32> to vector<1x384xf32>
    %10 = vector.broadcast %9 : vector<1x384xf32> to vector<8x384xf32>
    %11 = vector.broadcast %cst_3 : f32 to vector<8x384xf32>
    %12 = arith.select %8, %10, %11 : vector<8x384xi1>, vector<8x384xf32>
    %c0_4 = arith.constant 0 : index
    %c0_5 = arith.constant 0 : index
    %13 = vector.load %arg3[%c0_4, %c0_5] : memref<8x384xf32, #tpu.memory_space<vmem>>, vector<8x384xf32>
    tpu.vector_store %arg3[%c0_4, %c0_5], %12 {strides = array<i32>} : memref<8x384xf32, #tpu.memory_space<vmem>>, vector<8x384xf32>,
    return
  }
  func.func @transform_0(%arg0: i32) -> (i32, i32) {
    %c0_i32 = arith.constant 0 : i32
    %c0_i32_0 = arith.constant 0 : i32
    return %arg0, %c0_i32 : i32, i32
  }
  func.func @transform_1(%arg0: i32) -> (i32, i32) {
    %c0_i32 = arith.constant 0 : i32
    %c0_i32_0 = arith.constant 0 : i32
    return %arg0, %c0_i32 : i32, i32
  }
  func.func @transform_2(%arg0: i32) -> (i32, i32) {
    %c0_i32 = arith.constant 0 : i32
    %c0_i32_0 = arith.constant 0 : i32
    return %arg0, %c0_i32 : i32, i32
  }
}

</mosaic_0001>

<bundles_post_ra>
// kernel: tpu_custom_call.1
= control target key start
LH: loop header
LB: loop body
LE: loop exit
PB: predicated region body
PF: predicated region fallthrough
CT: control target
= control target key end

     0   :  { %7 = vsyncpa [#allocation3], 0  ;;  %s205_s0 = inlined_call_operand.hbm [shape: f32[2,384], index: 0, kind: input, shape index: {}]   ;;  %s206_s1 = inlined_call_operand.hbm [shape: f32[2,384], index: 1, kind: input, shape index: {}]   ;;  %s207_s2 = inlined_call_operand.hbm [shape: f32[8,384], index: 2, kind: output, shape index: {}]  }
   0x1   :  { %8 = vsyncpa [#allocation6], 0 }
   0x2   :  { %9 = vsyncpa [#allocation4], 0  ;;  %s177_s9 = smov [#allocation2]   ;;  %s178_s11 = smov [#allocation5]  }
   0x3   :  { %s16_s10 = sshll.u32 %s177_s9, 4  ;;  %s26_s12 = sshll.u32 %s178_s11, 4  ;;  %s17_s10 = int_to_ptr.vmem [resolvable:$true] %s16_s10  ;;  %s27_s12 = int_to_ptr.vmem [resolvable:$true] %s26_s12 }
   0x4   :  { %s119_s13 = scalar_lea.vmem %s17_s10, 96  ;;  %p124_p1 = scmp.lt.s32.totalorder %s17_s10, %s17_s10 }
   0x5   :  { %p120_p0 = scmp.ne.s32.totalorder %s17_s10, %s119_s13  ;;  %p125_p2 = scmp.lt.s32.totalorder %s119_s13, %s119_s13 }
   0x7   :  { %p126_p3 = por %p125_p2, %p124_p1 }
   0x9   :  { %p127_p4 = pnand %p126_p3, %p120_p0 }
   0xb   :  { %130 = shalt.err (!%p127_p4)
}
   0xc   :  { %19 = dma.hbm_to_vmem [thread:$0]  %s205_s0, 96, %s17_s10, [#allocation3]  }
   0xd   :  { %s139_s16 = scalar_lea.vmem %s27_s12, 96  ;;  %p144_p6 = scmp.lt.s32.totalorder %s27_s12, %s27_s12 }
   0xe   :  { %p140_p5 = scmp.ne.s32.totalorder %s27_s12, %s139_s16  ;;  %p145_p7 = scmp.lt.s32.totalorder %s139_s16, %s139_s16 }
  0x10   :  { %p146_p8 = por %p145_p7, %p144_p6 }
  0x12   :  { %p147_p9 = pnand %p146_p8, %p140_p5 }
  0x14   :  { %150 = shalt.err (!%p147_p9)
}
  0x15   :  { %29 = dma.hbm_to_vmem [thread:$0]  %s206_s1, 96, %s27_s12, [#allocation6]  }
  0x16   :  { %171 = dma.done.wait [#allocation3], 96  }
  0x17   :  { %172 = vsyncadd [#allocation3], 4294967200 }
  0x18   :  { %173 = dma.done.wait [#allocation6], 96  }
  0x19   :  { %174 = vsyncadd [#allocation6], 4294967200  ;;  %v45_v0 = vlaneseq  ;;  %v179_v1 = vmov 1983009808   ;;  %v36_v5 = vld [vmem:[#allocation2] sm:$0x3f] }
  0x1a   :  { %v43_v2 = vunpack.c.l.s4 %v179_v1  ;;  %v37_v6 = vld [vmem:[#allocation5] sm:$0x3f]  ;;  %vm60_vm0 = vcmask 1041408   ;;  %s180_s0 = smov [#allocation7]  }
  0x1b   :  { %v46_v4 = vshrl.u32 %v45_v0, 7  ;;  %v38_v7 = vsub.f32 %v36_v5, %v37_v6  ;;  %s97_s1 = sshll.u32 %s180_s0, 4  ;;  %s98_s1 = int_to_ptr.vmem [resolvable:$true] %s97_s1 }
  0x1c   :  { %v44_v3 = vunpack.c.0.s8 %v43_v2  ;;  %s151_s19 = scalar_lea.vmem %s98_s1, 384  ;;  %p156_p11 = scmp.lt.s32.totalorder %s98_s1, %s98_s1 }
  0x1d   :  { %v39_v9 = vand.u32 2147483647, %v38_v7  ;;  %vm84_vm1 = vcmp.eq.s32.totalorder %v46_v4, 0  ;;  %p152_p10 = scmp.ne.s32.totalorder %s98_s1, %s151_s19  ;;  %p157_p12 = scmp.lt.s32.totalorder %s151_s19, %s151_s19 }
  0x1e   :  { %v47_v8 = vsub.s32 %v44_v3, %v46_v4 }
  0x1f   :  { %v41_v10 = vcombine.high %v39_v9, %v39_v9  ;;  %p158_p13 = por %p157_p12, %p156_p11 }
  0x20   :  { %v48_v11 = vrot.slane %v39_v9, %v47_v8 }
  0x21   :  { %v55_v12 = vrot.slane %v41_v10, %v47_v8  ;;  %p159_p0 = pnand %p158_p13, %p152_p10 }
  0x22   :  { %v61_v13 = vsel %vm60_vm0, %v48_v11, 0.0  ;;  %v56_v14 = vcombine.high %v48_v11, %v48_v11 }
  0x23   :  { %v62_v15 = vrot.slane %v61_v13, 4  ;;  %v75_v17 = vsel %vm60_vm0, %v55_v12, 0.0 }
  0x24   :  { %v68_v16 = vsel %vm60_vm0, %v56_v14, 0.0  ;;  %v76_v20 = vrot.slane %v75_v17, 4 }
  0x25   :  { %v63_v18 = vadd.f32 %v62_v15, %v61_v13  ;;  %v69_v19 = vrot.slane %v68_v16, 4 }
  0x26   :  { %v77_v23 = vadd.f32 %v76_v20, %v75_v17 }
  0x27   :  { %v64_v21 = vrot.slane %v63_v18, 2  ;;  %v70_v22 = vadd.f32 %v69_v19, %v68_v16 }
  0x28   :  { %v78_v26 = vrot.slane %v77_v23, 2 }
  0x29   :  { %v65_v24 = vadd.f32 %v64_v21, %v63_v18  ;;  %v71_v25 = vrot.slane %v70_v22, 2 }
  0x2a   :  { %v79_v29 = vadd.f32 %v78_v26, %v77_v23 }
  0x2b   :  { %v66_v27 = vrot.slane %v65_v24, 1  ;;  %v72_v28 = vadd.f32 %v71_v25, %v70_v22 }
  0x2c   :  { %v80_v32 = vrot.slane %v79_v29, 1 }
  0x2d   :  { %v67_v30 = vadd.f32 %v66_v27, %v65_v24  ;;  %v73_v31 = vrot.slane %v72_v28, 1 }
  0x2e   :  { %v81_v35 = vadd.f32 %v80_v32, %v79_v29 }
  0x2f   :  { %v85_v33 = vsel %vm84_vm1, %v67_v30, 0.0  ;;  %v74_v34 = vadd.f32 %v73_v31, %v72_v28 }
  0x30   :  { %88 = vst [vmem:[#allocation7] sm:$0xff] %v85_v33  ;;  %v87_v37 = vsel %vm84_vm1, %v81_v35, 0.0 }
  0x31   :  { %v86_v36 = vsel %vm84_vm1, %v74_v34, 0.0  ;;  %90 = vst [vmem:[#allocation7 + $0x10] sm:$0xff] %v87_v37 }
  0x32   :  { %89 = vst [vmem:[#allocation7 + $0x8] sm:$0xff] %v86_v36 }
  0x33   :  { %162 = shalt.err (!%p159_p0)
}
  0x34   :  { %100 = dma.vmem_to_hbm [thread:$0]  %s98_s1, 384, %s207_s2, [#allocation4]  }
  0x35   :  { %175 = dma.done.wait [#allocation4], 384  }
  0x36   :  { %176 = vsyncadd [#allocation4], 4294966912 }
  0x37   :  { %104 = vsyncpa [#allocation3], 1 }
  0x38   :  { %105 = vsyncpa [#allocation6], 1 }
  0x39   :  { %106 = vsyncpa [#allocation4], 1 }

</bundles_post_ra>
